<compile_context>
chip_gen: v7x
topology: tpu7x:2x2x1
jax: 0.10.0
libtpu: 0.0.40
codegen_flags: <defaults>
</compile_context>

<pallas_src>
import functools
import math

import jax
import jax.numpy as jnp
from jax import lax
from jax.experimental import pallas as pl
from jax.experimental.pallas import tpu as pltpu


def _round_up(x, m):
    return (x + m - 1) // m * m


_NEG_BIG = -1e30  # finite "-inf" for masked (padded) keys -> no NaNs anywhere


def _attn_kernel(q_ref, k_ref, v_ref, o_ref, q_sc, m_sc, l_sc, acc_sc, *,
                 scale, length, kv_tile, kv_steps, need_mask):
    """One (head-tile, query-tile, kv-tile) grid step.

    q_ref : (BH, C, TQ)   changes only with (b, t); resident across kv axis
    k_ref : (BH, C, TKV)
    v_ref : (BH, C, TKV)
    o_ref : (BH, C, TQ)   written on the last kv step
    q_sc  : (BH, C, TQ)   pre-scaled q in the matmul dtype, filled at j == 0
    m/l   : (BH, 1, TQ)   running row-max / denominator (queries on lanes)
    acc   : (BH, C, TQ)   fp32 running numerator
    """
    j = pl.program_id(2)

    @pl.when(j == 0)
    def _():
        # Fold the softmax scale (ch**-0.25 on both q and k in the reference
        # == ch**-0.5 on q alone) into q ONCE per (b, t) group instead of
        # rescaling the full (TKV, TQ) fp32 logits tile every kv step.
        q_sc[...] = (q_ref[...] * scale).astype(q_sc.dtype)
        m_sc[...] = jnp.full_like(m_sc, -jnp.inf)
        l_sc[...] = jnp.zeros_like(l_sc)
        acc_sc[...] = jnp.zeros_like(acc_sc)

    q = q_sc[...]
    k = k_ref[...].astype(q.dtype)   # no-op when matmul dtype == input dtype
    v = v_ref[...].astype(q.dtype)

    # w[b, s, t] = sum_c k[b,c,s] * (scale * q[b,c,t])
    # kv axis on sublanes, query axis on lanes: the MXU takes the transposed
    # operands natively and every later broadcast is along lanes.
    w = lax.dot_general(k, q, (((1,), (1,)), ((0,), (0,))),
                        preferred_element_type=jnp.float32)

    if need_mask:
        def _mask_tail(wv):
            s_idx = (j * kv_tile
                     + lax.broadcasted_iota(jnp.int32, (1, kv_tile, 1), 1))
            return jnp.where(s_idx < length, wv, _NEG_BIG)

        if kv_steps == 1:
            w = _mask_tail(w)
        else:
            # Only the last kv tile contains padded keys; gate the
            # iota/compare/select there instead of paying it on every step.
            w = lax.cond(j == kv_steps - 1, _mask_tail, lambda wv: wv, w)

    m_prev = m_sc[...]                                       # (BH, 1, TQ)
    m_new = jnp.maximum(m_prev, jnp.max(w, axis=1, keepdims=True))
    alpha = jnp.exp(m_prev - m_new)                          # (BH, 1, TQ)
    p = jnp.exp(w - m_new)                                   # (BH, TKV, TQ)

    l_sc[...] = alpha * l_sc[...] + jnp.sum(p, axis=1, keepdims=True)

    # acc[b, c, t] += sum_s v[b,c,s] * p[b,s,t]   (weights cast to the matmul
    # dtype, matching the torch reference's .type(weight.dtype) before PV).
    pv = lax.dot_general(v, p.astype(v.dtype), (((2,), (1,)), ((0,), (0,))),
                         preferred_element_type=jnp.float32)
    acc_sc[...] = alpha * acc_sc[...] + pv
    m_sc[...] = m_new

    @pl.when(j == kv_steps - 1)
    def _():
        o_ref[...] = (acc_sc[...] *
                      pl.reciprocal(l_sc[...], approx=True)).astype(o_ref.dtype)


def _vmem_limits():
    """Generation-aware (compiler vmem limit, tile-sizing budget) in bytes.

    v5e/v6e have 128 MiB of VMEM per core, v7x only 64 MiB; derive both from
    the hardware so the same code neither spills on v7x nor leaves half of
    v5e/v6e's VMEM unused.
    """
    try:
        cap = int(pltpu.get_tpu_info().vmem_capacity_bytes)
    except Exception:
        cap = 64 << 20          # conservative fallback (safe on every chip)
    # Headroom for Mosaic internal scratch + un-counted fp32 intermediates.
    limit = max(32 << 20, min(int(cap * 0.80), cap - (12 << 20)))
    budget = int(limit * 0.85)
    return limit, budget


def _pick_bh_tile(bh, ch, tq_tile, kv_tile, in_itemsize, cmp_itemsize,
                  budget, need_two_parallel):
    """Largest head-batch per grid step that fits the VMEM budget.

    Accounts for the double-buffered q/k/v/out blocks, the scratch buffers and
    ~3 live copies of the (kv_tile, tq_tile) fp32 logits intermediates
    (w, p, p-cast) so the budget is not silently blown on v7x.
    """
    per_head = (
        2 * ch * tq_tile * in_itemsize        # q block (double-buffered)
        + 2 * ch * tq_tile * in_itemsize      # out block (double-buffered)
        + 2 * 2 * ch * kv_tile * in_itemsize  # k, v blocks (double-buffered)
        + ch * tq_tile * cmp_itemsize         # pre-scaled q scratch
        + ch * tq_tile * 4                    # fp32 numerator scratch
        + 2 * 8 * tq_tile * 4                 # m, l scratch (sublane-padded)
        + 3 * kv_tile * tq_tile * 4           # live fp32 w / p / cast-p tiles
    )
    tile = max(1, budget // max(per_head, 1))
    tile = min(tile, bh)
    if need_two_parallel and bh >= 2:
        # v7x has 2 TensorCores: keep >=2 steps on the parallel axes so one
        # core never idles (negligible extra step overhead on v5e/v6e).
        tile = min(tile, bh // 2)
    return int(max(tile, 1))


def _pick_seq_tile(length):
    """Default sequence tile (multiple of 128) for both the Tq and kv axes."""
    t128 = _round_up(length, 128)
    if t128 <= 1024:
        return t128
    # Prefer a tile in [512, 1024] that divides the 128-padded length (keeps
    # padding <= 127 keys); otherwise fall back to 512-wide tiles.
    for cand in range(1024, 383, -128):
        if t128 % cand == 0:
            return cand
    return 512


def qkv_attention_legacy(qkv, n_heads, *, kv_tile=None, tq_tile=None,
                         matmul_dtype=None):
    """QKVAttentionLegacy.forward (mask=None, rel_pos=None).

    qkv: [N, H*3*C, T]  ->  [N, H*C, T]

    matmul_dtype: optional MXU operand dtype (e.g. jnp.bfloat16 on v6e/v7x for
    ~2-4x matmul throughput and half the k/v traffic).  Defaults to the input
    dtype so the numerics match the reference module.
    """
    bs, width, length = qkv.shape
    assert width % (3 * n_heads) == 0
    ch = width // (3 * n_heads)
    bh = bs * n_heads

    # T lives on the 128-lane axis.  Tile it for BOTH queries and keys so the
    # q/out blocks, the fp32 numerator and the fp32 logits stay a few MiB
    # regardless of sequence length.
    auto_tile = _pick_seq_tile(length)
    kv_tile = auto_tile if kv_tile is None else kv_tile
    tq_tile = auto_tile if tq_tile is None else tq_tile
    assert kv_tile % 128 == 0 and tq_tile % 128 == 0
    t_pad = _round_up(length, math.lcm(kv_tile, tq_tile))
    kv_steps = t_pad // kv_tile
    tq_steps = t_pad // tq_tile

    cmp_dtype = jnp.dtype(qkv.dtype if matmul_dtype is None else matmul_dtype)

    vmem_limit, vmem_budget = _vmem_limits()
    bh_tile = _pick_bh_tile(bh, ch, tq_tile, kv_tile, qkv.dtype.itemsize,
                            cmp_dtype.itemsize, vmem_budget,
                            need_two_parallel=(tq_steps < 2))
    bh_pad = _round_up(bh, bh_tile)   # pad heads instead of walking down to a
                                      # possibly-degenerate exact divisor

    qkv_r = qkv.reshape(bh, 3, ch, length)            # plane 0/1/2 = q/k/v
    pad_t = t_pad - length
    pad_b = bh_pad - bh
    if pad_t or pad_b:
        qkv_r = jnp.pad(qkv_r, ((0, pad_b), (0, 0), (0, 0), (0, pad_t)))

    kernel = functools.partial(
        _attn_kernel,
        scale=1.0 / math.sqrt(ch),     # (ch**-0.25)**2 folded into q once
        length=length,
        kv_tile=kv_tile,
        kv_steps=kv_steps,
        need_mask=(pad_t != 0),
    )

    grid = (bh_pad // bh_tile, tq_steps, kv_steps)

    out = pl.pallas_call(
        kernel,
        out_shape=jax.ShapeDtypeStruct((bh_pad, ch, t_pad), qkv.dtype),
        grid_spec=pltpu.PrefetchScalarGridSpec(
            num_scalar_prefetch=0,
            grid=grid,
            in_specs=[
                # q / k / v as three independent DMA streams (plane squeezed);
                # no in-kernel slicing of a fused 3C block.
                pl.BlockSpec((bh_tile, pl.Squeezed(), ch, tq_tile),
                             lambda b, t, j: (b, 0, 0, t)),
                pl.BlockSpec((bh_tile, pl.Squeezed(), ch, kv_tile),
                             lambda b, t, j: (b, 1, 0, j)),
                pl.BlockSpec((bh_tile, pl.Squeezed(), ch, kv_tile),
                             lambda b, t, j: (b, 2, 0, j)),
            ],
            out_specs=pl.BlockSpec((bh_tile, ch, tq_tile),
                                   lambda b, t, j: (b, 0, t)),
            scratch_shapes=[
                pltpu.VMEM((bh_tile, ch, tq_tile), cmp_dtype),    # scaled q
                pltpu.VMEM((bh_tile, 1, tq_tile), jnp.float32),   # running max
                pltpu.VMEM((bh_tile, 1, tq_tile), jnp.float32),   # running denom
                pltpu.VMEM((bh_tile, ch, tq_tile), jnp.float32),  # fp32 numerator
            ],
        ),
        compiler_params=pltpu.CompilerParams(
            dimension_semantics=("parallel", "parallel", "arbitrary"),
            vmem_limit_bytes=vmem_limit,
        ),
    )(qkv_r, qkv_r, qkv_r)

    if pad_b:
        out = out[:bh]
    if pad_t:
        out = out[..., :length]
    return out.reshape(bs, n_heads * ch, length)


def _reference(qkv, n_heads):
    bs, width, length = qkv.shape
    ch = width // (3 * n_heads)
    qkv_r = qkv.reshape(bs * n_heads, 3 * ch, length)
    q, k, v = qkv_r[:, :ch], qkv_r[:, ch:2 * ch], qkv_r[:, 2 * ch:]
    scale = 1.0 / math.sqrt(math.sqrt(ch))
    w = jnp.einsum('bct,bcs->bts', q * scale, k * scale)
    w = jax.nn.softmax(w.astype(jnp.float32), axis=-1).astype(qkv.dtype)
    a = jnp.einsum('bts,bcs->bct', w, v)
    return a.reshape(bs, -1, length)


if __name__ == "__main__":
    # TODO(synk): mask / rel_pos paths of the PyTorch module are not
    # implemented (optional tensor/callable; forward here corresponds to None).
    key = jax.random.PRNGKey(0)

    # Case 1: small demo shapes (single kv/tq block; T padded 16 -> 128).
    n_heads, N, C, T = 2, 2, 8, 16
    qkv = jax.random.normal(key, (N, n_heads * 3 * C, T), dtype=jnp.float32)
    out = jax.block_until_ready(qkv_attention_legacy(qkv, n_heads))
    ref = _reference(qkv, n_heads)
    assert out.shape == (N, n_heads * C, T)
    assert jnp.allclose(out, ref, atol=1e-2, rtol=1e-2), \
        float(jnp.max(jnp.abs(out - ref)))

    # Case 2: multi-block online softmax + last-tile-only padded-key masking
    # (T=200 padded to 256, kv_tile=128 -> 2 kv steps).
    n_heads2, N2, C2, T2 = 2, 1, 8, 200
    qkv2 = jax.random.normal(jax.random.PRNGKey(0),
                             (N2, n_heads2 * 3 * C2, T2), dtype=jnp.float32)
    out2 = jax.block_until_ready(
        qkv_attention_legacy(qkv2, n_heads2, kv_tile=128))
    ref2 = _reference(qkv2, n_heads2)
    assert jnp.allclose(out2, ref2, atol=1e-2, rtol=1e-2), \
        float(jnp.max(jnp.abs(out2 - ref2)))

    # Case 3: exercise query tiling (3 Tq tiles x 3 kv tiles) with masking.
    n_heads3, N3, C3, T3 = 3, 1, 8, 300
    qkv3 = jax.random.normal(jax.random.PRNGKey(0),
                             (N3, n_heads3 * 3 * C3, T3), dtype=jnp.float32)
    out3 = jax.block_until_ready(
        qkv_attention_legacy(qkv3, n_heads3, kv_tile=128, tq_tile=128))
    ref3 = _reference(qkv3, n_heads3)
    assert jnp.allclose(out3, ref3, atol=1e-2, rtol=1e-2), \
        float(jnp.max(jnp.abs(out3 - ref3)))

    print("KERNEL_OK")
</pallas_src>

<mosaic_0001>
module attributes {stable_mosaic.version = 11 : i64} {
  func.func @_attn_kernel(%arg0: i32, %arg1: i32, %arg2: i32, %arg3: memref<2x1x8x128xf32, #tpu.memory_space<vmem>>, %arg4: memref<2x1x8x128xf32, #tpu.memory_space<vmem>>, %arg5: memref<2x1x8x128xf32, #tpu.memory_space<vmem>>, %arg6: memref<2x8x128xf32, #tpu.memory_space<vmem>>, %arg7: memref<2x8x128xf32, #tpu.memory_space<vmem>>, %arg8: memref<2x1x128xf32, #tpu.memory_space<vmem>>, %arg9: memref<2x1x128xf32, #tpu.memory_space<vmem>>, %arg10: memref<2x8x128xf32, #tpu.memory_space<vmem>>) attributes {dimension_semantics = [#tpu.dimension_semantics<parallel>, #tpu.dimension_semantics<parallel>, #tpu.dimension_semantics<arbitrary>], iteration_bounds = array<i64: 2, 1, 1>, scalar_prefetch = 0 : i64, scratch_operands = 4 : i64, tpu.core_type = #tpu.core_type<tc>, window_params = [{transform_indices = @transform_0, window_bounds = array<i64: 2, 1, 8, 128>}, {transform_indices = @transform_1, window_bounds = array<i64: 2, 1, 8, 128>}, {transform_indices = @transform_2, window_bounds = array<i64: 2, 1, 8, 128>}, {transform_indices = @transform_3, window_bounds = array<i64: 2, 8, 128>}]} {
    %c0_i32 = arith.constant 0 : i32
    %0 = arith.cmpi eq, %arg2, %c0_i32 : i32
    %1 = arith.extui %0 : i1 to i32
    %c0_i32_0 = arith.constant 0 : i32
    %2 = arith.cmpi ne, %1, %c0_i32_0 : i32
    scf.if %2 {
      %c0_35 = arith.constant 0 : index
      %c0_36 = arith.constant 0 : index
      %c0_37 = arith.constant 0 : index
      %c0_38 = arith.constant 0 : index
      %44 = vector.load %arg3[%c0_35, %c0_36, %c0_37, %c0_38] : memref<2x1x8x128xf32, #tpu.memory_space<vmem>>, vector<2x1x8x128xf32>
      %45 = vector.shape_cast %44 : vector<2x1x8x128xf32> to vector<2x8x128xf32>
      %cst_39 = arith.constant 0.353553385 : f32
      %46 = vector.broadcast %cst_39 : f32 to vector<2x8x128xf32>
      %47 = arith.mulf %45, %46 : vector<2x8x128xf32>
      %c0_40 = arith.constant 0 : index
      %c0_41 = arith.constant 0 : index
      %c0_42 = arith.constant 0 : index
      %48 = vector.load %arg7[%c0_40, %c0_41, %c0_42] : memref<2x8x128xf32, #tpu.memory_space<vmem>>, vector<2x8x128xf32>
      tpu.vector_store %arg7[%c0_40, %c0_41, %c0_42], %47 {strides = array<i32>} : memref<2x8x128xf32, #tpu.memory_space<vmem>>, vector<2x8x128xf32>,
      %cst_43 = arith.constant 0xFF800000 : f32
      %49 = vector.broadcast %cst_43 : f32 to vector<2x1x128xf32>
      %c0_44 = arith.constant 0 : index
      %c0_45 = arith.constant 0 : index
      %c0_46 = arith.constant 0 : index
      %50 = vector.load %arg8[%c0_44, %c0_45, %c0_46] : memref<2x1x128xf32, #tpu.memory_space<vmem>>, vector<2x1x128xf32>
      tpu.vector_store %arg8[%c0_44, %c0_45, %c0_46], %49 {strides = array<i32>} : memref<2x1x128xf32, #tpu.memory_space<vmem>>, vector<2x1x128xf32>,
      %cst_47 = arith.constant 0.000000e+00 : f32
      %51 = vector.broadcast %cst_47 : f32 to vector<2x1x128xf32>
      %c0_48 = arith.constant 0 : index
      %c0_49 = arith.constant 0 : index
      %c0_50 = arith.constant 0 : index
      %52 = vector.load %arg9[%c0_48, %c0_49, %c0_50] : memref<2x1x128xf32, #tpu.memory_space<vmem>>, vector<2x1x128xf32>
      tpu.vector_store %arg9[%c0_48, %c0_49, %c0_50], %51 {strides = array<i32>} : memref<2x1x128xf32, #tpu.memory_space<vmem>>, vector<2x1x128xf32>,
      %cst_51 = arith.constant 0.000000e+00 : f32
      %53 = vector.broadcast %cst_51 : f32 to vector<2x8x128xf32>
      %c0_52 = arith.constant 0 : index
      %c0_53 = arith.constant 0 : index
      %c0_54 = arith.constant 0 : index
      %54 = vector.load %arg10[%c0_52, %c0_53, %c0_54] : memref<2x8x128xf32, #tpu.memory_space<vmem>>, vector<2x8x128xf32>
      tpu.vector_store %arg10[%c0_52, %c0_53, %c0_54], %53 {strides = array<i32>} : memref<2x8x128xf32, #tpu.memory_space<vmem>>, vector<2x8x128xf32>,
    } else {
    }
    %c0 = arith.constant 0 : index
    %c0_1 = arith.constant 0 : index
    %c0_2 = arith.constant 0 : index
    %3 = vector.load %arg7[%c0, %c0_1, %c0_2] : memref<2x8x128xf32, #tpu.memory_space<vmem>>, vector<2x8x128xf32>
    %c0_3 = arith.constant 0 : index
    %c0_4 = arith.constant 0 : index
    %c0_5 = arith.constant 0 : index
    %c0_6 = arith.constant 0 : index
    %4 = vector.load %arg4[%c0_3, %c0_4, %c0_5, %c0_6] : memref<2x1x8x128xf32, #tpu.memory_space<vmem>>, vector<2x1x8x128xf32>
    %5 = vector.shape_cast %4 : vector<2x1x8x128xf32> to vector<2x8x128xf32>
    %c0_7 = arith.constant 0 : index
    %c0_8 = arith.constant 0 : index
    %c0_9 = arith.constant 0 : index
    %c0_10 = arith.constant 0 : index
    %6 = vector.load %arg5[%c0_7, %c0_8, %c0_9, %c0_10] : memref<2x1x8x128xf32, #tpu.memory_space<vmem>>, vector<2x1x8x128xf32>
    %7 = vector.shape_cast %6 : vector<2x1x8x128xf32> to vector<2x8x128xf32>
    %cst = arith.constant dense<0.000000e+00> : vector<2x128x128xf32>
    %8 = tpu.matmul %5, %3, %cst {dimension_numbers = #tpu.dot_dimension_numbers<[1], [1], [2], [2], [0, 0, 0, 2, 1, 2], [0], [0]>} : vector<2x8x128xf32>, vector<2x8x128xf32>, vector<2x128x128xf32> -> vector<2x128x128xf32>
    %c128_i32 = arith.constant 128 : i32
    %9 = arith.muli %arg2, %c128_i32 : i32
    %10 = tpu.iota {dimensions = array<i32: 1>} : vector<1x128x1xi32>
    %11 = vector.broadcast %9 : i32 to vector<1x128x1xi32>
    %12 = arith.addi %11, %10 : vector<1x128x1xi32>
    %c16_i32 = arith.constant 16 : i32
    %13 = vector.broadcast %c16_i32 : i32 to vector<1x128x1xi32>
    %14 = arith.cmpi slt, %12, %13 : vector<1x128x1xi32>
    %cst_11 = arith.constant -1.000000e+30 : f32
    %15 = vector.shape_cast %14 : vector<1x128x1xi1> to vector<1x128x1xi1>
    %16 = vector.broadcast %15 : vector<1x128x1xi1> to vector<2x128x128xi1>
    %17 = vector.broadcast %cst_11 : f32 to vector<2x128x128xf32>
    %18 = arith.select %16, %8, %17 : vector<2x128x128xi1>, vector<2x128x128xf32>
    %c0_12 = arith.constant 0 : index
    %c0_13 = arith.constant 0 : index
    %c0_14 = arith.constant 0 : index
    %19 = vector.load %arg8[%c0_12, %c0_13, %c0_14] : memref<2x1x128xf32, #tpu.memory_space<vmem>>, vector<2x1x128xf32>
    %cst_15 = arith.constant dense<0xFF800000> : vector<2x128xf32>
    %20 = vector.multi_reduction <maximumf>, %18, %cst_15 [1] : vector<2x128x128xf32> to vector<2x128xf32>
    %21 = vector.shape_cast %20 : vector<2x128xf32> to vector<2x1x128xf32>
    %22 = arith.maximumf %19, %21 : vector<2x1x128xf32>
    %23 = arith.subf %19, %22 : vector<2x1x128xf32>
    %24 = math.exp %23 : vector<2x1x128xf32>
    %25 = vector.broadcast %22 : vector<2x1x128xf32> to vector<2x128x128xf32>
    %26 = arith.subf %18, %25 : vector<2x128x128xf32>
    %27 = math.exp %26 : vector<2x128x128xf32>
    %c0_16 = arith.constant 0 : index
    %c0_17 = arith.constant 0 : index
    %c0_18 = arith.constant 0 : index
    %28 = vector.load %arg9[%c0_16, %c0_17, %c0_18] : memref<2x1x128xf32, #tpu.memory_space<vmem>>, vector<2x1x128xf32>
    %29 = arith.mulf %24, %28 : vector<2x1x128xf32>
    %cst_19 = arith.constant dense<0.000000e+00> : vector<2x128xf32>
    %30 = vector.multi_reduction <add>, %27, %cst_19 [1] : vector<2x128x128xf32> to vector<2x128xf32>
    %31 = vector.shape_cast %30 : vector<2x128xf32> to vector<2x1x128xf32>
    %32 = arith.addf %29, %31 : vector<2x1x128xf32>
    %c0_20 = arith.constant 0 : index
    %c0_21 = arith.constant 0 : index
    %c0_22 = arith.constant 0 : index
    %33 = vector.load %arg9[%c0_20, %c0_21, %c0_22] : memref<2x1x128xf32, #tpu.memory_space<vmem>>, vector<2x1x128xf32>
    tpu.vector_store %arg9[%c0_20, %c0_21, %c0_22], %32 {strides = array<i32>} : memref<2x1x128xf32, #tpu.memory_space<vmem>>, vector<2x1x128xf32>,
    %cst_23 = arith.constant dense<0.000000e+00> : vector<2x8x128xf32>
    %34 = tpu.matmul %7, %27, %cst_23 {dimension_numbers = #tpu.dot_dimension_numbers<[2], [1], [1], [2], [0, 0, 0, 1, 1, 2], [0], [0]>} : vector<2x8x128xf32>, vector<2x128x128xf32>, vector<2x8x128xf32> -> vector<2x8x128xf32>
    %c0_24 = arith.constant 0 : index
    %c0_25 = arith.constant 0 : index
    %c0_26 = arith.constant 0 : index
    %35 = vector.load %arg10[%c0_24, %c0_25, %c0_26] : memref<2x8x128xf32, #tpu.memory_space<vmem>>, vector<2x8x128xf32>
    %36 = vector.broadcast %24 : vector<2x1x128xf32> to vector<2x8x128xf32>
    %37 = arith.mulf %36, %35 : vector<2x8x128xf32>
    %38 = arith.addf %37, %34 : vector<2x8x128xf32>
    %c0_27 = arith.constant 0 : index
    %c0_28 = arith.constant 0 : index
    %c0_29 = arith.constant 0 : index
    %39 = vector.load %arg10[%c0_27, %c0_28, %c0_29] : memref<2x8x128xf32, #tpu.memory_space<vmem>>, vector<2x8x128xf32>
    tpu.vector_store %arg10[%c0_27, %c0_28, %c0_29], %38 {strides = array<i32>} : memref<2x8x128xf32, #tpu.memory_space<vmem>>, vector<2x8x128xf32>,
    %c0_30 = arith.constant 0 : index
    %c0_31 = arith.constant 0 : index
    %c0_32 = arith.constant 0 : index
    %40 = vector.load %arg8[%c0_30, %c0_31, %c0_32] : memref<2x1x128xf32, #tpu.memory_space<vmem>>, vector<2x1x128xf32>
    tpu.vector_store %arg8[%c0_30, %c0_31, %c0_32], %22 {strides = array<i32>} : memref<2x1x128xf32, #tpu.memory_space<vmem>>, vector<2x1x128xf32>,
    %c0_i32_33 = arith.constant 0 : i32
    %41 = arith.cmpi eq, %arg2, %c0_i32_33 : i32
    %42 = arith.extui %41 : i1 to i32
    %c0_i32_34 = arith.constant 0 : i32
    %43 = arith.cmpi ne, %42, %c0_i32_34 : i32
    scf.if %43 {
      %c0_35 = arith.constant 0 : index
      %c0_36 = arith.constant 0 : index
      %c0_37 = arith.constant 0 : index
      %44 = vector.load %arg10[%c0_35, %c0_36, %c0_37] : memref<2x8x128xf32, #tpu.memory_space<vmem>>, vector<2x8x128xf32>
      %c0_38 = arith.constant 0 : index
      %c0_39 = arith.constant 0 : index
      %c0_40 = arith.constant 0 : index
      %45 = vector.load %arg9[%c0_38, %c0_39, %c0_40] : memref<2x1x128xf32, #tpu.memory_space<vmem>>, vector<2x1x128xf32>
      %46 = tpu.reciprocal %45 {approx = true} : vector<2x1x128xf32> -> vector<2x1x128xf32>
      %47 = vector.broadcast %46 : vector<2x1x128xf32> to vector<2x8x128xf32>
      %48 = arith.mulf %44, %47 : vector<2x8x128xf32>
      %c0_41 = arith.constant 0 : index
      %c0_42 = arith.constant 0 : index
      %c0_43 = arith.constant 0 : index
      %49 = vector.load %arg6[%c0_41, %c0_42, %c0_43] : memref<2x8x128xf32, #tpu.memory_space<vmem>>, vector<2x8x128xf32>
      tpu.vector_store %arg6[%c0_41, %c0_42, %c0_43], %48 {strides = array<i32>} : memref<2x8x128xf32, #tpu.memory_space<vmem>>, vector<2x8x128xf32>,
    } else {
    }
    return
  }
  func.func @transform_0(%arg0: i32, %arg1: i32, %arg2: i32) -> (i32, i32, i32, i32) {
    %c0_i32 = arith.constant 0 : i32
    %c0_i32_0 = arith.constant 0 : i32
    %c0_i32_1 = arith.constant 0 : i32
    return %arg0, %c0_i32, %c0_i32_0, %arg1 : i32, i32, i32, i32
  }
  func.func @transform_1(%arg0: i32, %arg1: i32, %arg2: i32) -> (i32, i32, i32, i32) {
    %c1_i32 = arith.constant 1 : i32
    %c0_i32 = arith.constant 0 : i32
    %c0_i32_0 = arith.constant 0 : i32
    return %arg0, %c1_i32, %c0_i32, %arg2 : i32, i32, i32, i32
  }
  func.func @transform_2(%arg0: i32, %arg1: i32, %arg2: i32) -> (i32, i32, i32, i32) {
    %c2_i32 = arith.constant 2 : i32
    %c0_i32 = arith.constant 0 : i32
    %c0_i32_0 = arith.constant 0 : i32
    return %arg0, %c2_i32, %c0_i32, %arg2 : i32, i32, i32, i32
  }
  func.func @transform_3(%arg0: i32, %arg1: i32, %arg2: i32) -> (i32, i32, i32) {
    %c0_i32 = arith.constant 0 : i32
    %c0_i32_0 = arith.constant 0 : i32
    return %arg0, %c0_i32, %arg1 : i32, i32, i32
  }
}

</mosaic_0001>

<bundles_post_ra>
// kernel: tpu_custom_call.1
= control target key start
LH: loop header
LB: loop body
LE: loop exit
PB: predicated region body
PF: predicated region fallthrough
CT: control target
= control target key end

     0   :  { %s2402_s0 = inlined_call_operand.hbm [shape: f32[4,3,8,128], index: 0, kind: input, shape index: {}]   ;;  %s2403_s1 = inlined_call_operand.hbm [shape: f32[4,3,8,128], index: 1, kind: input, shape index: {}]   ;;  %s2404_s2 = inlined_call_operand.hbm [shape: f32[4,3,8,128], index: 2, kind: input, shape index: {}]   ;;  %s2405_s3 = inlined_call_operand.hbm [shape: f32[4,8,128], index: 3, kind: output, shape index: {}]  }
   0x1   :  { %2417 = sst [smem:[#allocation19_spill]] %s2402_s0 }
   0x2   :  { %2418 = sst [smem:[#allocation20_spill]] %s2403_s1 }
   0x3   :  { %8 = vsyncpa [#allocation7], 0 }
   0x4   :  { %10 = vsyncpa [#allocation7 + $0x1], 0 }
   0x5   :  { %11 = vsyncpa [#allocation10], 0 }
   0x6   :  { %13 = vsyncpa [#allocation10 + $0x1], 0 }
   0x7   :  { %14 = vsyncpa [#allocation8], 0 }
   0x8   :  { %16 = vsyncpa [#allocation8 + $0x1], 0  ;;  %s2050_s12 = smov 0   ;;  %s2052_s13 = smov 0  }
   0x9   :  { %s2054_s14 = smov 0   ;;  %s2056_s15 = smov 0  }
   0xa   :  { %s2058_s16 = smov 0   ;;  %s2060_s17 = smov 0  }
   0xb LB: > { %2419 = sst [smem:[#allocation16_spill]] %s2011_s16  ;;  %s2081_s18 = sadd.s32 4294967295, %s2015_s17   ;;  %s2015_s17 = sphi %s2060_s17, %s22_s17   ;;  %s2011_s16 = sphi %s2058_s16, %s2442_s16   ;;  %s2007_s15 = sphi %s2056_s15, %s2441_s15   ;;  %s2003_s14 = sphi %s2054_s14, %s2445_s14   ;;  %s1999_s13 = sphi %s2052_s13, %s2444_s13   ;;  %s1995_s12 = sphi %s2050_s12, %s2443_s12  }
   0xc   : > { %s1443_s19 = sadd.s32 4294967294, %s2015_s17   ;;  %s41_s20 = sadd.s32 1, %s2011_s16 }
   0xd   : > { %s50_s21 = sadd.s32 1, %s2003_s14  ;;  %p43_p0 = scmp.ge.s32.totalorder %s41_s20, 2 }
   0xe   : > { %p57_p1 = scmp.ne.s32.totalorder %s2003_s14, %s1999_s13  ;;  %p58_p2 = scmp.eq.s32.totalorder %s2015_s17, 0 }
   0xf   : > { %p63_p3 = scmp.ne.s32.totalorder %s1999_s13, %s1995_s12  ;;  %s2447_s20 = smov (%p43_p0, %s41_s20), 0 }
  0x10   : > { %2420 = sst [smem:[#allocation17_spill]] %s2447_s20  ;;  %p2093_p4 = por %p58_p2, %p57_p1 }
  0x11   : > { %p64_p5 = scmp.eq.s32.totalorder %s2081_s18, 0  ;;  %s45_s23 = ssub.s32 %s2011_s16, %s2447_s20 }
  0x12   : > { %p145_p6 = scmp.eq.s32.totalorder %s2081_s18, 1  ;;  %p48_p7 = scmp.eq.s32.totalorder %s45_s23, 0 }
  0x13   : > { %p2101_p8 = por %p64_p5, %p63_p3  ;;  %p151_p10 = scmp.eq.s32.totalorder %s1443_s19, 1 }
  0x14   : > { %p2105_p9 = por %p145_p6, %p57_p1  ;;  %p1758_p13 = scmp.lt.s32.totalorder %s2015_s17, 2 }
  0x15   : > { %s2422_s24 = scalar_select %p2101_p8, 1, 0 }
  0x16   : > { %s2423_s25 = scalar_select %p2105_p9, 1, 0 }
  0x17   : > { %s2110_s26 = scalar_select %p48_p7, %s2003_s14, %s50_s21  }
  0x18   : > { %p2112_p11 = por %p151_p10, %p63_p3  ;;  %s2406_s28 = sand.u32 1, %s2003_s14  }
  0x19   : > { %2424 = sst [smem:[#allocation18_spill]] %s2110_s26  ;;  %s2121_s29 = sshll.u32 %s2406_s28, 4 }
  0x1a   : > { %s2425_s27 = scalar_select %p2112_p11, 1, 0 }
  0x1b   : > { %s2124_s30 = smul.u32 768, %s2011_s16  ;;  %p2128_p0 = pnand %p1758_p13, %p2093_p4 }
  0x1c   : > { %s194_s5 = sand.u32 1, %s2015_s17   ;;  %s2427_s1 = sld [smem:[#allocation20_spill]] }
  0x1d   : > { %s198_s9 = scalar_lea.vmem [#allocation9], %s2121_s29  ;;  %s2142_s19 = scalar_lea.sflag [#allocation10], %s194_s5 }
  0x1e   : > { %s208_s10 = sshll.u32 %s198_s9, 4  ;;  %p2147_p2 = pneg %p2128_p0  ;;  %s2140_s10 = int_to_ptr.vmem [resolvable:$true] %s208_s10 }
  0x22   : > { %s1348_s8 = scalar_lea.hbm %s2427_s1, %s2124_s30  ;;  %s1842_s7 = scalar_lea.hbm %s2427_s1, 1536 }
  0x23   : > { %s2138_s11 = scalar_lea.hbm %s1348_s8, 128  ;;  %s1867_s21 = scalar_lea.hbm %s1348_s8, 384 }
  0x24   : > { %p1838_p1 = scmp.ne.s32.totalorder %s2138_s11, %s1867_s21  ;;  %p1843_p5 = scmp.lt.u32.totalorder %s2138_s11, %s2427_s1 }
  0x25   : > { %p1844_p6 = scmp.lt.u32.totalorder %s1842_s7, %s1867_s21  ;;  %p1846_p10 = scmp.lt.u32.totalorder %s1867_s21, %s2138_s11 }
  0x26   : > { %p1840_p3 = pnand %p2147_p2, %p1838_p1 }
  0x27   : > { %p1845_p7 = por %p1844_p6, %p1843_p5 }
  0x28   : > { %p1841_p4 = pneg %p1840_p3 }
  0x29   : > { %p1847_p13 = por %p1846_p10, %p1845_p7 }
  0x2b   : > { %p1848_p12 = pnand %p1847_p13, %p1841_p4 }
  0x2d   : > { %1851 = shalt.err (!%p1848_p12)
}
  0x2e   : > { %s1852_s5 = scalar_lea.vmem %s2140_s10, 256  ;;  %s2017_s8 = smov [#allocation9]  }
  0x2f   : > { %p1853_p1 = scmp.ne.s32.totalorder %s2140_s10, %s1852_s5  ;;  %s1857_s23 = sshll.u32 %s2017_s8, 4  ;;  %s1858_s23 = int_to_ptr.vmem [resolvable:$false] %s1857_s23 }
  0x30   : > { %s1859_s28 = scalar_lea.vmem %s1858_s23, 512  ;;  %p1860_p9 = scmp.lt.s32.totalorder %s2140_s10, %s1858_s23 }
  0x31   : > { %p1855_p3 = pnand %p1853_p1, %p2147_p2  ;;  %p1861_p8 = scmp.lt.s32.totalorder %s1859_s28, %s1852_s5 }
  0x33   : > { %p1856_p11 = pneg %p1855_p3  ;;  %p1862_p5 = por %p1861_p8, %p1860_p9 }
  0x35   : > { %p1863_p6 = pnand %p1862_p5, %p1856_p11 }
  0x37   : > { %1866 = shalt.err (!%p1863_p6)
}
  0x38   : > { %s2409_s21 = smov 384   ;;  %s2411_s6 = smov 128  }
  0x39   : > { %s2413_s7 = smov 8   ;;  %p1454_p8 = scmp.ge.s32.totalorder %s2015_s17, 1 }
  0x3a   : > { %1750 = dma.hbm_to_vmem [thread:$0]  (!%p2128_p0), %s2138_s11, 256, %s2140_s10, %s2142_s19, %s2409_s21, %s2411_s6, %s2413_s7  }
  0x3b   : > { %p240_p9 = scmp.lt.s32.totalorder %s2015_s17, 3  ;;  %s2430_s0 = sld [smem:[#allocation19_spill]] }
  0x3c   : > { %s175_s28 = scalar_lea.vmem [#allocation6], %s2121_s29  ;;  %s2193_s21 = scalar_lea.hbm %s2404_s2, %s2124_s30 }
  0x3d   : > { %p2176_p11 = pnand %p1454_p8, %p240_p9  ;;  %s184_s1 = sshll.u32 %s175_s28, 4  ;;  %s2187_s1 = int_to_ptr.vmem [resolvable:$true] %s184_s1 }
  0x3e   : > { %s2431_s6 = sand.u32 1, %s2003_s14  }
  0x3f   : > { %s2429_s9 = scalar_select %p2176_p11, 1, 0 }
  0x40   : > { %s2197_s7 = scalar_lea.sflag [#allocation7], %s2431_s6 }
  0x41   : > { %s2184_s23 = scalar_lea.hbm %s2430_s0, %s2124_s30  ;;  %s1873_s16 = scalar_lea.hbm %s2430_s0, 1536 }
  0x42   : > { %s1868_s20 = scalar_lea.hbm %s2184_s23, 256  ;;  %p1874_p10 = scmp.lt.u32.totalorder %s2184_s23, %s2430_s0 }
  0x43   : > { %p1869_p12 = scmp.ne.s32.totalorder %s2184_s23, %s1868_s20  ;;  %p1875_p13 = scmp.lt.u32.totalorder %s1873_s16, %s1868_s20 }
  0x44   : > { %p1877_p3 = scmp.lt.u32.totalorder %s1868_s20, %s2184_s23 }
  0x45   : > { %p1871_p4 = pnand %p1869_p12, %p2147_p2  ;;  %p1876_p1 = por %p1875_p13, %p1874_p10 }
  0x47   : > { %p1872_p7 = pneg %p1871_p4  ;;  %p1878_p5 = por %p1877_p3, %p1876_p1 }
  0x49   : > { %p1879_p6 = pnand %p1878_p5, %p1872_p7 }
  0x4b   : > { %1882 = shalt.err (!%p1879_p6)
}
  0x4c   : > { %s1883_s30 = scalar_lea.vmem %s2187_s1, 256  ;;  %s2021_s6 = smov [#allocation6]  }
  0x4d   : > { %p1884_p8 = scmp.ne.s32.totalorder %s2187_s1, %s1883_s30  ;;  %s1888_s10 = sshll.u32 %s2021_s6, 4  ;;  %s1889_s10 = int_to_ptr.vmem [resolvable:$false] %s1888_s10 }
  0x4e   : > { %s1890_s26 = scalar_lea.vmem %s1889_s10, 512  ;;  %p1891_p4 = scmp.lt.s32.totalorder %s2187_s1, %s1889_s10 }
  0x4f   : > { %p1886_p9 = pnand %p1884_p8, %p2147_p2  ;;  %p1892_p11 = scmp.lt.s32.totalorder %s1890_s26, %s1883_s30 }
  0x51   : > { %p1887_p12 = pneg %p1886_p9  ;;  %p1893_p10 = por %p1892_p11, %p1891_p4 }
  0x53   : > { %p1894_p13 = pnand %p1893_p10, %p1887_p12 }
  0x55   : > { %1897 = shalt.err (!%p1894_p13)
}
  0x56   : > { %s2432_s16 = smov 8   ;;  %s2433_s20 = smov 128  }
  0x57   : > { %s2434_s11 = smov 384   ;;  %s2225_s5 = scalar_lea.hbm %s2193_s21, 256 }
  0x58   : > { %1747 = dma.hbm_to_vmem [thread:$0]  (!%p2128_p0), %s2184_s23, 256, %s2187_s1, %s2197_s7, %s2434_s11, %s2433_s20, %s2432_s16  }
  0x59   : > { %s222_s8 = scalar_lea.vmem [#allocation11], %s2121_s29  ;;  %s1928_s30 = scalar_lea.hbm %s2193_s21, 512 }
  0x5a   : > { %s232_s28 = sshll.u32 %s222_s8, 4  ;;  %p1899_p11 = scmp.ne.s32.totalorder %s2225_s5, %s1928_s30  ;;  %s2228_s28 = int_to_ptr.vmem [resolvable:$true] %s232_s28 }
  0x5b   : > { %s1903_s26 = scalar_lea.hbm %s2404_s2, 1536  ;;  %p1904_p3 = scmp.lt.u32.totalorder %s2225_s5, %s2404_s2 }
  0x5c   : > { %p1901_p7 = pnand %p1899_p11, %p2147_p2  ;;  %p1905_p5 = scmp.lt.u32.totalorder %s1903_s26, %s1928_s30 }
  0x5d   : > { %p1907_p8 = scmp.lt.u32.totalorder %s1928_s30, %s2225_s5 }
  0x5e   : > { %p1902_p1 = pneg %p1901_p7  ;;  %p1906_p6 = por %p1905_p5, %p1904_p3 }
  0x60   : > { %p1908_p9 = por %p1907_p8, %p1906_p6 }
  0x62   : > { %p1909_p12 = pnand %p1908_p9, %p1902_p1 }
  0x64   : > { %1912 = shalt.err (!%p1909_p12)
}
  0x65   : > { %s1913_s29 = scalar_lea.vmem %s2228_s28, 256  ;;  %s2022_s21 = smov [#allocation11]  }
  0x66   : > { %p1914_p4 = scmp.ne.s32.totalorder %s2228_s28, %s1913_s29  ;;  %s1918_s7 = sshll.u32 %s2022_s21, 4  ;;  %s1919_s7 = int_to_ptr.vmem [resolvable:$false] %s1918_s7 }
  0x67   : > { %s1920_s0 = scalar_lea.vmem %s1919_s7, 512  ;;  %p1921_p11 = scmp.lt.s32.totalorder %s2228_s28, %s1919_s7 }
  0x68   : > { %p1916_p10 = pnand %p1914_p4, %p2147_p2  ;;  %p1922_p7 = scmp.lt.s32.totalorder %s1920_s0, %s1913_s29 }
  0x6a   : > { %p1917_p13 = pneg %p1916_p10  ;;  %p1923_p3 = por %p1922_p7, %p1921_p11 }
  0x6c   : > { %p1924_p5 = pnand %p1923_p3, %p1917_p13 }
  0x6e   : > { %1927 = shalt.err (!%p1924_p5)
}
  0x6f   : > { %1753 = dma.hbm_to_vmem [thread:$0]  (!%p2128_p0), %s2225_s5, 256, %s2228_s28, %s2142_s19, %s2434_s11, %s2433_s20, %s2432_s16  }
  0x70   : > { %p2435_p2 = scmp.ne.s32.totalorder %s2429_s9, 0 }
  0x71   : > { %s2258_s22 = sand.u32 (!%p2435_p2), 1, %s1999_s13   ;;  %p2436_p1 = scmp.ne.s32.totalorder (!%p2435_p2), %s2422_s24, 0 }
  0x72   : > { %244 = sbr.rel (%p2435_p2) target bundleno = 848 (0x350), region = 32  ;;  %s2261_s23 = sshll.u32 (!%p2435_p2), %s2258_s22, 4 }
  0x73   : > { %s247_s4 = scalar_lea.sflag (!%p2435_p2), [#allocation7], %s2258_s22  ;;  %s250_s8 = scalar_lea.vmem (!%p2435_p2), [#allocation6], %s2261_s23 }
  0x79   : > { %1982 = dma.done.wait (%p2436_p1), %s247_s4, 256  }
  0x7a   : > { %1984 = vsyncadd (%p2436_p1), %s247_s4, 4294967040  ;;  %s255_s19 = sand.u32 1, %s2081_s18   ;;  %s259_s16 = scalar_lea.vmem [#allocation9], %s2261_s23 }
  0x7b   : > { %s256_s9 = scalar_lea.sflag [#allocation10], %s255_s19 }
  0x7c   : > { %1986 = dma.done.wait (%p2436_p1), %s256_s9, 512  }
  0x7d   : > { %1988 = vsyncadd (%p2436_p1), %s256_s9, 4294966784  ;;  %v323_v0 = vld [vmem:[%s259_s16] sm:$0xff]  ;;  %v324_v3 = vld [vmem:[%s259_s16 + $0x8] sm:$0xff]  ;;  %vm359_vm0 = vcmask 64512   ;;  %v2023_v24 = vmov -inf   ;;  %v2024_v25 = vmov 0.0  }
  0x7e   : > { %327 = vxpose.xlu0.b32.start.end [1/1] (short) %v323_v0, 128  ;;  %v309_v1 = vld [vmem:[%s250_s8] sm:$0xff]  ;;  %v310_v4 = vld [vmem:[%s250_s8 + $0x8] sm:$0xff]  ;;  %315 = vst [vmem:[#allocation3] sm:$0x1] %v2023_v24  ;;  %316 = vst [vmem:[#allocation3 + $0x1] sm:$0x1] %v2023_v24  ;;  %v947_v0 = vlaneseq }
  0x7f   : > { %v311_v2 = vmul.f32 0.35355338, %v309_v1  ;;  %v312_v5 = vmul.f32 0.35355338, %v310_v4  ;;  %317 = vst [vmem:[#allocation4] sm:$0x1] %v2024_v25 }
  0x80   : > { %318 = vst [vmem:[#allocation4 + $0x1] sm:$0x1] %v2024_v25  ;;  %v2025_v26 = vmov 0.0|0.0   ;;  %vm2026_vm1 = vmmov 0   ;;  %s268_s18 = scalar_lea.vmem [#allocation11], %s2261_s23  ;;  %s300_s24 = scalar_lea.vmem [#allocation12], %s2261_s23 }
  0x81   : > { %1565 = vmatprep.subr.mxu0 %v311_v2  ;;  %1591 = vmatprep.subr.mxu1 %v312_v5  ;;  %s1305_s20 = sshll.u32 %s300_s24, 4  ;;  %s1496_s11 = sshll.u32 %s2007_s15, 8  ;;  %s2347_s20 = int_to_ptr.vmem [resolvable:$true] %s1305_s20 }
  0x82   : > { %1566 = vmatpush3.msra.mxu0 %v311_v2  ;;  %1592 = vmatpush3.msra.mxu1 %v312_v5  ;;  %s2353_s30 = scalar_lea.hbm %s2405_s3, %s1496_s11  ;;  %s1291_s6 = scalar_lea.sflag [#allocation8], %s2258_s22 }
  0x83   : > { %1687 = vmatprep.subr.bf16.mxu0 %v2025_v26  ;;  %1711 = vmatprep.subr.bf16.mxu1 %v2025_v26  ;;  %s1929_s10 = scalar_lea.vmem %s2347_s20, 256  ;;  %p2437_p6 = scmp.ne.s32.totalorder %s2423_s25, 0 }
  0x84   : > { %p1930_p0 = scmp.ne.s32.totalorder %s2347_s20, %s1929_s10  ;;  %s2027_s15 = smov [#allocation12]  }
  0x85   : > { %s1933_s26 = sshll.u32 %s2027_s15, 4  ;;  %s1934_s26 = int_to_ptr.vmem [resolvable:$false] %s1933_s26 }
  0x86   : > { %p1931_p8 = pnand %p1930_p0, %p2437_p6  ;;  %s1935_s1 = scalar_lea.vmem %s1934_s26, 512 }
  0x87   : > { %p1936_p12 = scmp.lt.s32.totalorder %s2347_s20, %s1934_s26  ;;  %p1937_p4 = scmp.lt.s32.totalorder %s1935_s1, %s1929_s10 }
  0x88   : > { %p1932_p9 = pneg %p1931_p8 }
  0x89   : > { %p1938_p10 = por %p1937_p4, %p1936_p12 }
  0x8b   : > { %p1939_p13 = pnand %p1938_p10, %p1932_p9 }
  0xbb   : > { %553 = vxpose.xlu0.b32.start.end [1/1] (short) %v324_v3, 128  ;;  %v948_v3 = vshrl.u32 %v947_v0, 7 }
  0xfe   : > { %v343_v6 = vpop.trf.xlu0 }
  0xff   : > { %1567 = vmatprep.mubr.msk.f32.mxu0 %vm359_vm0, %v343_v6 }
 0x102   : > { %v344_v7 = vpop.trf.xlu0 }
 0x103   : > { %1568 = vmatmul.mubr.msk.f32.vlgmr.msra.gmra.mrb[0].mxu0 %vm359_vm0, %v344_v7  ;;  %v893_v7 = vld [vmem:[#allocation3] sm:$0x1] }
 0x106   : > { %v345_v8 = vpop.trf.xlu0 }
 0x107   : > { %1570 = vmatprep.mubr.msk.f32.mxu0 %vm359_vm0, %v345_v8 }
 0x10a   : > { %v346_v9 = vpop.trf.xlu0 }
 0x10b   : > { %1571 = vmatmul.mubr.msk.f32.gmra.mrb[2].mxu0 %vm359_vm0, %v346_v9  ;;  %v2311_v9 = vsub.s32 0, %v948_v3  ;;  %v325_v3 = vld [vmem:[%s268_s18] sm:$0xff] }
 0x10e   : > { %v347_v10 = vpop.trf.xlu0 }
 0x10f   : > { %1573 = vmatprep.mubr.msk.f32.mxu0 %vm359_vm0, %v347_v10 }
 0x112   : > { %v348_v11 = vpop.trf.xlu0 }
 0x113   : > { %1574 = vmatmul.mubr.msk.f32.gmra.mrb[4].mxu0 %vm359_vm0, %v348_v11 }
 0x116   : > { %v349_v12 = vpop.trf.xlu0 }
 0x117   : > { %1576 = vmatprep.mubr.msk.f32.mxu0 %vm359_vm0, %v349_v12 }
 0x11a   : > { %v350_v13 = vpop.trf.xlu0 }
 0x11b   : > { %1577 = vmatmul.mubr.msk.f32.gmra.mrb[6].mxu0 %vm359_vm0, %v350_v13 }
 0x11e   : > { %v351_v14 = vpop.trf.xlu0 }
 0x11f   : > { %1579 = vmatprep.mubr.msk.f32.mxu0 %vm359_vm0, %v351_v14 }
 0x122   : > { %v352_v15 = vpop.trf.xlu0 }
 0x123   : > { %1580 = vmatmul.mubr.msk.f32.gmra.mrb[8].mxu0 %vm359_vm0, %v352_v15 }
 0x126   : > { %v353_v16 = vpop.trf.xlu0 }
 0x127   : > { %1582 = vmatprep.mubr.msk.f32.mxu0 %vm359_vm0, %v353_v16 }
 0x12a   : > { %v354_v17 = vpop.trf.xlu0 }
 0x12b   : > { %1583 = vmatmul.mubr.msk.f32.gmra.mrb[10].mxu0 %vm359_vm0, %v354_v17 }
 0x12e   : > { %v355_v18 = vpop.trf.xlu0 }
 0x12f   : > { %1585 = vmatprep.mubr.msk.f32.mxu0 %vm359_vm0, %v355_v18 }
 0x132   : > { %v356_v19 = vpop.trf.xlu0 }
 0x133   : > { %1586 = vmatmul.mubr.msk.f32.gmra.mrb[12].mxu0 %vm359_vm0, %v356_v19 }
 0x136   : > { %v357_v20 = vpop.trf.xlu0 }
 0x137   : > { %1588 = vmatprep.mubr.msk.f32.mxu0 %vm359_vm0, %v357_v20 }
 0x13a   : > { %v358_v21 = vpop.trf.xlu0 }
 0x13b   : > { %1589 = vmatmul.mubr.msk.f32.gmra.mrb[14].mxu0 %vm359_vm0, %v358_v21 }
 0x13c   : > { %1649 = vmatprep.mubr.msk.f32.mxu0 %vm2026_vm1, %v2024_v25 }
 0x13e   : > { %v569_v22 = vpop.trf.xlu0 }
 0x13f   : > { %1593 = vmatprep.mubr.msk.f32.mxu1 %vm359_vm0, %v569_v22 }
 0x142   : > { %v570_v23 = vpop.trf.xlu0 }
 0x143   : > { %1594 = vmatmul.mubr.msk.f32.vlgmr.msra.gmra.mrb[0].mxu1 %vm359_vm0, %v570_v23 }
 0x146   : > { %v571_v27 = vpop.trf.xlu0 }
 0x147   : > { %1596 = vmatprep.mubr.msk.f32.mxu1 %vm359_vm0, %v571_v27 }
 0x14a   : > { %v572_v28 = vpop.trf.xlu0 }
 0x14b   : > { %1597 = vmatmul.mubr.msk.f32.gmra.mrb[2].mxu1 %vm359_vm0, %v572_v28 }
 0x14e   : > { %v573_v29 = vpop.trf.xlu0 }
 0x14f   : > { %1599 = vmatprep.mubr.msk.f32.mxu1 %vm359_vm0, %v573_v29 }
 0x152   : > { %v574_v30 = vpop.trf.xlu0 }
 0x153   : > { %1600 = vmatmul.mubr.msk.f32.gmra.mrb[4].mxu1 %vm359_vm0, %v574_v30 }
 0x156   : > { %v575_v31 = vpop.trf.xlu0 }
 0x157   : > { %1602 = vmatprep.mubr.msk.f32.mxu1 %vm359_vm0, %v575_v31 }
 0x15a   : > { %v576_v32 = vpop.trf.xlu0 }
 0x15b   : > { %1603 = vmatmul.mubr.msk.f32.gmra.mrb[6].mxu1 %vm359_vm0, %v576_v32 }
 0x15e   : > { %v577_v33 = vpop.trf.xlu0 }
 0x15f   : > { %1605 = vmatprep.mubr.msk.f32.mxu1 %vm359_vm0, %v577_v33 }
 0x162   : > { %v578_v34 = vpop.trf.xlu0 }
 0x163   : > { %1606 = vmatmul.mubr.msk.f32.gmra.mrb[8].mxu1 %vm359_vm0, %v578_v34 }
 0x166   : > { %v579_v35 = vpop.trf.xlu0 }
 0x167   : > { %1608 = vmatprep.mubr.msk.f32.mxu1 %vm359_vm0, %v579_v35 }
 0x16a   : > { %v580_v36 = vpop.trf.xlu0 }
 0x16b   : > { %1609 = vmatmul.mubr.msk.f32.gmra.mrb[10].mxu1 %vm359_vm0, %v580_v36 }
 0x16e   : > { %v581_v41 = vpop.trf.xlu0 }
 0x16f   : > { %1611 = vmatprep.mubr.msk.f32.mxu1 %vm359_vm0, %v581_v41 }
 0x172   : > { %v582_v46 = vpop.trf.xlu0 }
 0x173   : > { %1612 = vmatmul.mubr.msk.f32.gmra.mrb[12].mxu1 %vm359_vm0, %v582_v46 }
 0x176   : > { %v583_v53 = vpop.trf.xlu0 }
 0x177   : > { %1614 = vmatprep.mubr.msk.f32.mxu1 %vm359_vm0, %v583_v53 }
 0x17a   : > { %v584_v58 = vpop.trf.xlu0 }
 0x17b   : > { %1615 = vmatmul.mubr.msk.f32.gmra.mrb[14].mxu1 %vm359_vm0, %v584_v58 }
 0x17c   : > { %1684 = vmatprep.mubr.msk.f32.mxu1 %vm2026_vm1, %v2024_v25 }
 0x1d6   : > { %v1569_v37 = vpop.f32.mrb[0].mxu0 }
 0x1d7   : > { %v896_v38 = vmax.f32 %v1569_v37, -1e+30  ;;  %v474_v39 = vpop.f32.mrb[1].mxu0 }
 0x1d8   : > { %v895_v40 = vmax.f32 %v474_v39, -1e+30 }
 0x1d9   : > { %v898_v42 = vmax.f32 %v896_v38, -1e+30 }
 0x1da   : > { %v897_v43 = vmax.f32 %v895_v40, -1e+30 }
 0x1db   : > { %v900_v44 = vmax.f32 %v898_v42, -1e+30 }
 0x1dc   : > { %v899_v45 = vmax.f32 %v897_v43, -1e+30 }
 0x1dd   : > { %v902_v47 = vmax.f32 %v900_v44, -1e+30 }
 0x1de   : > { %v901_v48 = vmax.f32 %v899_v45, -1e+30  ;;  %v1572_v49 = vpop.f32.mrb[2].mxu0 }
 0x1df   : > { %v904_v50 = vmax.f32 %v902_v47, -1e+30  ;;  %v484_v51 = vpop.f32.mrb[3].mxu0 }
 0x1e0   : > { %v903_v52 = vmax.f32 %v901_v48, -1e+30 }
 0x1e1   : > { %v906_v54 = vmax.f32 %v904_v50, -1e+30 }
 0x1e2   : > { %v905_v55 = vmax.f32 %v903_v52, -1e+30 }
 0x1e3   : > { %v908_v56 = vmax.f32 %v906_v54, -1e+30 }
 0x1e4   : > { %v907_v57 = vmax.f32 %v905_v55, -1e+30 }
 0x1e6   : > { %v909_v59 = vmax.f32 %v907_v57, %v908_v56  ;;  %v1575_v60 = vpop.f32.mrb[4].mxu0 }
 0x1e7   : > { %v494_v61 = vpop.f32.mrb[5].mxu0 }
 0x1e8   : > { %v910_v62 = vrot.slane %v909_v59, 4 }
 0x1ea   : > { %v911_v63 = vmax.f32 %v909_v59, %v910_v62 }
 0x1ec   : > { %v912_v1 = vrot.slane %v911_v63, 2 }
 0x1ee   : > { %v913_v2 = vmax.f32 %v911_v63, %v912_v1  ;;  %v1578_v4 = vpop.f32.mrb[6].mxu0 }
 0x1ef   : > { %v504_v5 = vpop.f32.mrb[7].mxu0 }
 0x1f0   : > { %v914_v6 = vrot.slane %v913_v2, 1 }
 0x1f2   : > { %v915_v8 = vmax.f32 %v913_v2, %v914_v6 }
 0x1f4   : > { %v937_v10 = vmax.f32 %v893_v7, %v915_v8 }
 0x1f6   : > { %v950_v11 = vrot.slane %v937_v10, %v2311_v9  ;;  %1263 = vst [vmem:[#allocation3] sm:$0x1] %v937_v10  ;;  %v1581_v12 = vpop.f32.mrb[8].mxu0  ;;  %v939_v48 = vsub.f32 %v893_v7, %v937_v10 }
 0x1f7   : > { %v514_v13 = vpop.f32.mrb[9].mxu0  ;;  %v1053_v12 = vld [vmem:[#allocation4] sm:$0x1] }
 0x1f8   : > { %v957_v14 = vsub.f32 %v474_v39, %v950_v11  ;;  %v958_v15 = vsub.f32 %v1569_v37, %v950_v11  ;;  %v959_v16 = vsub.f32 -1e+30, %v950_v11  ;;  %v941_v55 = vmul.f32 1.442695, %v939_v48 }
 0x1fa   : > { %v989_v17 = vmul.f32 1.442695, %v957_v14  ;;  %v991_v18 = vmul.f32 1.442695, %v958_v15  ;;  %v993_v19 = vmul.f32 1.442695, %v959_v16 }
 0x1fc   : > { %1817 = vpow2.f32 %v989_v17 }
 0x1fd   : > { %1819 = vpow2.f32 %v991_v18  ;;  %v894_v18 = vld [vmem:[#allocation3 + $0x1] sm:$0x1] }
 0x1fe   : > { %v1584_v20 = vpop.f32.mrb[10].mxu0  ;;  %1821 = vpow2.f32 %v993_v19 }
 0x1ff   : > { %v524_v21 = vpop.f32.mrb[11].mxu0  ;;  %1823 = vpow2.f32 %v941_v55 }
 0x206   : > { %v1818_v22 = vpop.eup %1817  ;;  %v1587_v23 = vpop.f32.mrb[12].mxu0 }
 0x207   : > { %v1820_v24 = vpop.eup %1819  ;;  %v534_v25 = vpop.f32.mrb[13].mxu0 }
 0x208   : > { %v1057_v27 = vadd.f32 %v1820_v24, %v1818_v22  ;;  %v1688_v28 = vpack.c.bf16 %v1820_v24, %v1818_v22  ;;  %v1822_v29 = vpop.eup %1821 }
 0x209   : > { %v1691_v32 = vpack.c.bf16 %v1822_v29, %v1822_v29  ;;  %v2327_v11 = vpop.eup %1823 }
 0x20a   : > { %v1058_v30 = vadd.f32 %v1822_v29, %v1057_v27  ;;  %1689 = vmatpush3.bf16.msra.mxu0 %v1688_v28  ;;  %v1055_v16 = vmul.f32 %v2327_v11, %v1053_v12 }
 0x20b   : > { %1690 = vmatprep.subr.bf16.mxu0 %v2025_v26 }
 0x20c   : > { %v1059_v31 = vadd.f32 %v1822_v29, %v1058_v30 }
 0x20e   : > { %v1060_v33 = vadd.f32 %v1822_v29, %v1059_v31  ;;  %1692 = vmatpush3.bf16.msra.mxu0 %v1691_v32  ;;  %v1590_v34 = vpop.f32.mrb[14].mxu0 }
 0x20f   : > { %v544_v35 = vpop.f32.mrb[15].mxu0  ;;  %1693 = vmatprep.subr.bf16.mxu0 %v2025_v26 }
 0x210   : > { %v1061_v36 = vadd.f32 %v1822_v29, %v1060_v33 }
 0x212   : > { %v1062_v37 = vadd.f32 %v1822_v29, %v1061_v36  ;;  %1695 = vmatpush3.bf16.msra.mxu0 %v1691_v32 }
 0x213   : > { %1696 = vmatprep.subr.bf16.mxu0 %v2025_v26 }
 0x214   : > { %v1063_v38 = vadd.f32 %v1822_v29, %v1062_v37 }
 0x216   : > { %v1064_v39 = vadd.f32 %v1822_v29, %v1063_v38  ;;  %1698 = vmatpush3.bf16.msra.mxu0 %v1691_v32  ;;  %v2317_v40 = vpop.f32.mrb[0].mxu1 }
 0x217   : > { %v917_v41 = vmax.f32 %v2317_v40, -1e+30  ;;  %v699_v42 = vpop.f32.mrb[1].mxu1  ;;  %1699 = vmatprep.subr.bf16.mxu0 %v2025_v26 }
 0x218   : > { %v1065_v43 = vadd.f32 %v1822_v29, %v1064_v39  ;;  %v916_v44 = vmax.f32 %v699_v42, -1e+30 }
 0x219   : > { %v919_v45 = vmax.f32 %v917_v41, -1e+30 }
 0x21a   : > { %v1066_v46 = vadd.f32 %v1822_v29, %v1065_v43  ;;  %v918_v47 = vmax.f32 %v916_v44, -1e+30  ;;  %1701 = vmatpush3.bf16.msra.mxu0 %v1691_v32 }
 0x21b   : > { %v921_v49 = vmax.f32 %v919_v45, -1e+30  ;;  %1702 = vmatprep.subr.bf16.mxu0 %v2025_v26 }
 0x21c   : > { %v1067_v50 = vadd.f32 %v1822_v29, %v1066_v46  ;;  %v920_v51 = vmax.f32 %v918_v47, -1e+30 }
 0x21d   : > { %v923_v52 = vmax.f32 %v921_v49, -1e+30 }
 0x21e   : > { %v922_v53 = vmax.f32 %v920_v51, -1e+30  ;;  %1704 = vmatpush3.bf16.msra.mxu0 %v1691_v32  ;;  %v1068_v54 = vadd.f32 %v1822_v29, %v1067_v50 }
 0x21f   : > { %v925_v56 = vmax.f32 %v923_v52, -1e+30  ;;  %1705 = vmatprep.subr.bf16.mxu0 %v2025_v26 }
 0x220   : > { %v924_v57 = vmax.f32 %v922_v53, -1e+30  ;;  %v1069_v58 = vadd.f32 %v1822_v29, %v1068_v54  ;;  %v326_v53 = vld [vmem:[%s268_s18 + $0x8] sm:$0xff] }
 0x221   : > { %v927_v59 = vmax.f32 %v925_v56, -1e+30 }
 0x222   : > { %v926_v60 = vmax.f32 %v924_v57, -1e+30  ;;  %1707 = vmatpush3.bf16.msra.mxu0 %v1691_v32  ;;  %v1070_v61 = vadd.f32 %v1822_v29, %v1069_v58  ;;  %v1054_v58 = vld [vmem:[#allocation4 + $0x1] sm:$0x1] }
 0x223   : > { %v929_v62 = vmax.f32 %v927_v59, -1e+30  ;;  %1708 = vmatprep.subr.bf16.mxu0 %v2025_v26 }
 0x224   : > { %v928_v63 = vmax.f32 %v926_v60, -1e+30  ;;  %v1071_v0 = vadd.f32 %v1822_v29, %v1070_v61 }
 0x226   : > { %v930_v1 = vmax.f32 %v928_v63, %v929_v62  ;;  %1710 = vmatpush3.bf16.msra.mxu0 %v1691_v32  ;;  %v1072_v2 = vrot.slane %v1071_v0, 4  ;;  %v1598_v63 = vpop.f32.mrb[2].mxu1 }
 0x228   : > { %v931_v4 = vrot.slane %v930_v1, 4  ;;  %v1073_v5 = vadd.f32 %v1072_v2, %v1071_v0  ;;  %v709_v0 = vpop.f32.mrb[3].mxu1 }
 0x229   : > { %1650 = vmatmul.mubr.f32.vlgmr.msra.gmra.mrb[16].mxu0 %v325_v3 }
 0x22a   : > { %v932_v6 = vmax.f32 %v930_v1, %v931_v4  ;;  %v1074_v7 = vrot.slane %v1073_v5, 2  ;;  %v1601_v1 = vpop.f32.mrb[4].mxu1 }
 0x22c   : > { %v933_v8 = vrot.slane %v932_v6, 2  ;;  %v1075_v10 = vadd.f32 %v1074_v7, %v1073_v5 }
 0x22e   : > { %v934_v13 = vmax.f32 %v932_v6, %v933_v8  ;;  %v1076_v14 = vrot.slane %v1075_v10, 1 }
 0x230   : > { %v935_v15 = vrot.slane %v934_v13, 1  ;;  %v1077_v17 = vadd.f32 %v1076_v14, %v1075_v10 }
 0x232   : > { %v936_v19 = vmax.f32 %v934_v13, %v935_v15  ;;  %v1099_v20 = vadd.f32 %v1077_v17, %v1055_v16  ;;  %v1250_v15 = vrot.slane %v2327_v11, %v2311_v9 }
 0x234   : > { %v938_v21 = vmax.f32 %v894_v18, %v936_v19  ;;  %1101 = vst [vmem:[#allocation4] sm:$0x1] %v1099_v20  ;;  %v1257_v17 = vmul.f32 0.0, %v1250_v15 }
 0x236   : > { %v954_v22 = vrot.slane %v938_v21, %v2311_v9  ;;  %1264 = vst [vmem:[#allocation3 + $0x1] sm:$0x1] %v938_v21  ;;  %v940_v45 = vsub.f32 %v894_v18, %v938_v21 }
 0x238   : > { %v973_v23 = vsub.f32 %v699_v42, %v954_v22  ;;  %v974_v24 = vsub.f32 %v2317_v40, %v954_v22  ;;  %v975_v25 = vsub.f32 -1e+30, %v954_v22  ;;  %v943_v48 = vmul.f32 1.442695, %v940_v45 }
 0x23a   : > { %v1021_v27 = vmul.f32 1.442695, %v973_v23  ;;  %v1023_v28 = vmul.f32 1.442695, %v974_v24  ;;  %v1025_v29 = vmul.f32 1.442695, %v975_v25 }
 0x23b   : > { %v1270_v14 = vld [vmem:[#allocation4] sm:$0x1] }
 0x23c   : > { %1825 = vpow2.f32 %v1021_v27 }
 0x23d   : > { %1827 = vpow2.f32 %v1023_v28 }
 0x23e   : > { %1829 = vpow2.f32 %v1025_v29 }
 0x23f   : > { %1831 = vpow2.f32 %v943_v48 }
 0x240   : > { %1833 = vrcp.f32 %v1270_v14 }
 0x246   : > { %v1826_v30 = vpop.eup %1825 }
 0x247   : > { %v1828_v31 = vpop.eup %1827 }
 0x248   : > { %v1078_v32 = vadd.f32 %v1828_v31, %v1826_v30  ;;  %v1712_v33 = vpack.c.bf16 %v1828_v31, %v1826_v30  ;;  %v1830_v34 = vpop.eup %1829 }
 0x249   : > { %v1715_v37 = vpack.c.bf16 %v1830_v34, %v1830_v34  ;;  %v1832_v57 = vpop.eup %1831 }
 0x24a   : > { %v1079_v35 = vadd.f32 %v1830_v34, %v1078_v32  ;;  %1713 = vmatpush3.bf16.msra.mxu1 %v1712_v33  ;;  %v1056_v60 = vmul.f32 %v1832_v57, %v1054_v58  ;;  %v1834_v16 = vpop.eup %1833  ;;  %v1254_v24 = vrot.slane %v1832_v57, %v2311_v9 }
 0x24b   : > { %1714 = vmatprep.subr.bf16.mxu1 %v2025_v26  ;;  %v1279_v20 = vrot.slane %v1834_v16, %v2311_v9 }
 0x24c   : > { %v1080_v36 = vadd.f32 %v1830_v34, %v1079_v35  ;;  %v1258_v11 = vmul.f32 0.0, %v1254_v24 }
 0x24e   : > { %v1081_v38 = vadd.f32 %v1830_v34, %v1080_v36  ;;  %1716 = vmatpush3.bf16.msra.mxu1 %v1715_v37 }
 0x24f   : > { %1717 = vmatprep.subr.bf16.mxu1 %v2025_v26 }
 0x250   : > { %v1082_v39 = vadd.f32 %v1830_v34, %v1081_v38 }
 0x252   : > { %v1083_v40 = vadd.f32 %v1830_v34, %v1082_v39  ;;  %1719 = vmatpush3.bf16.msra.mxu1 %v1715_v37 }
 0x253   : > { %1720 = vmatprep.subr.bf16.mxu1 %v2025_v26 }
 0x254   : > { %v1084_v41 = vadd.f32 %v1830_v34, %v1083_v40 }
 0x256   : > { %v1085_v42 = vadd.f32 %v1830_v34, %v1084_v41  ;;  %1722 = vmatpush3.bf16.msra.mxu1 %v1715_v37 }
 0x257   : > { %1723 = vmatprep.subr.bf16.mxu1 %v2025_v26 }
 0x258   : > { %v1086_v43 = vadd.f32 %v1830_v34, %v1085_v42 }
 0x25a   : > { %v1087_v44 = vadd.f32 %v1830_v34, %v1086_v43  ;;  %1725 = vmatpush3.bf16.msra.mxu1 %v1715_v37 }
 0x25b   : > { %1726 = vmatprep.subr.bf16.mxu1 %v2025_v26 }
 0x25c   : > { %v1088_v46 = vadd.f32 %v1830_v34, %v1087_v44 }
 0x25e   : > { %v1089_v47 = vadd.f32 %v1830_v34, %v1088_v46  ;;  %1728 = vmatpush3.bf16.msra.mxu1 %v1715_v37 }
 0x25f   : > { %1729 = vmatprep.subr.bf16.mxu1 %v2025_v26 }
 0x260   : > { %v1090_v49 = vadd.f32 %v1830_v34, %v1089_v47 }
 0x262   : > { %v1091_v50 = vadd.f32 %v1830_v34, %v1090_v49  ;;  %1731 = vmatpush3.bf16.msra.mxu1 %v1715_v37 }
 0x263   : > { %1732 = vmatprep.subr.bf16.mxu1 %v2025_v26  ;;  %v719_v26 = vpop.f32.mrb[5].mxu1 }
 0x264   : > { %v1092_v51 = vadd.f32 %v1830_v34, %v1091_v50  ;;  %v1604_v2 = vpop.f32.mrb[6].mxu1 }
 0x265   : > { %v729_v3 = vpop.f32.mrb[7].mxu1 }
 0x266   : > { %v1093_v52 = vrot.slane %v1092_v51, 4  ;;  %1734 = vmatpush3.bf16.msra.mxu1 %v1715_v37  ;;  %v1607_v4 = vpop.f32.mrb[8].mxu1 }
 0x267   : > { %v739_v5 = vpop.f32.mrb[9].mxu1 }
 0x268   : > { %v1094_v54 = vadd.f32 %v1093_v52, %v1092_v51  ;;  %v1610_v6 = vpop.f32.mrb[10].mxu1 }
 0x269   : > { %1685 = vmatmul.mubr.f32.vlgmr.msra.gmra.mrb[16].mxu1 %v326_v53  ;;  %v749_v7 = vpop.f32.mrb[11].mxu1 }
 0x26a   : > { %v1095_v55 = vrot.slane %v1094_v54, 2  ;;  %v1613_v8 = vpop.f32.mrb[12].mxu1 }
 0x26b   : > { %v759_v10 = vpop.f32.mrb[13].mxu1 }
 0x26c   : > { %v1096_v56 = vadd.f32 %v1095_v55, %v1094_v54  ;;  %v1616_v12 = vpop.f32.mrb[14].mxu1 }
 0x26d   : > { %v769_v13 = vpop.f32.mrb[15].mxu1 }
 0x26e   : > { %v1097_v59 = vrot.slane %v1096_v56, 1 }
 0x270   : > { %v1098_v61 = vadd.f32 %v1097_v59, %v1096_v56 }
 0x272   : > { %v1100_v62 = vadd.f32 %v1098_v61, %v1056_v60 }
 0x274   : > { %1102 = vst [vmem:[#allocation4 + $0x1] sm:$0x1] %v1100_v62 }
 0x27b   : > { %v1271_v23 = vld [vmem:[#allocation4 + $0x1] sm:$0x1] }
 0x27c   : > { %1835 = vrcp.f32 %v1271_v23 }
 0x286   : > { %v1836_v25 = vpop.eup %1835 }
 0x287   : > { %v1283_v29 = vrot.slane %v1836_v25, %v2311_v9 }
 0x2fc   : > { %v1169_v18 = vpop.f32.mrb[16].mxu0 }
 0x2fd   : > { %v1259_v19 = vadd.f32 %v1257_v17, %v1169_v18  ;;  %v1651_v21 = vpop.f32.mrb[17].mxu0 }
 0x2ff   : > { %v1286_v22 = vmul.f32 %v1279_v20, %v1259_v19 }
 0x301   : > { %1288 = vst [vmem:[%s300_s24] sm:$0xff] %v1286_v22 }
 0x33c   : > { %v1239_v27 = vpop.f32.mrb[16].mxu1 }
 0x33d   : > { %v1260_v28 = vadd.f32 %v1258_v11, %v1239_v27  ;;  %v1686_v30 = vpop.f32.mrb[17].mxu1 }
 0x33f   : > { %v1287_v31 = vmul.f32 %v1283_v29, %v1260_v28 }
 0x341   : > { %1289 = vst [vmem:[%s300_s24 + $0x8] sm:$0xff] %v1287_v31 }
 0x342   : > { %1942 = shalt.err (!%p1939_p13)
}
 0x343   : > { %s1943_s29 = scalar_lea.hbm %s2353_s30, 256  ;;  %s1947_s0 = scalar_lea.hbm %s2405_s3, 512 }
 0x344   : > { %p1944_p11 = scmp.ne.s32.totalorder %s2353_s30, %s1943_s29  ;;  %p1948_p5 = scmp.lt.u32.totalorder %s2353_s30, %s2405_s3 }
 0x345   : > { %p1949_p2 = scmp.lt.u32.totalorder %s1947_s0, %s1943_s29  ;;  %p1951_p0 = scmp.lt.u32.totalorder %s1943_s29, %s2353_s30 }
 0x346   : > { %p1945_p7 = pnand %p1944_p11, %p2437_p6 }
 0x347   : > { %p1950_p1 = por %p1949_p2, %p1948_p5 }
 0x348   : > { %p1946_p3 = pneg %p1945_p7 }
 0x349   : > { %p1952_p8 = por %p1951_p0, %p1950_p1 }
 0x34b   : > { %p1953_p9 = pnand %p1952_p8, %p1946_p3 }
 0x34d   : > { %1956 = shalt.err (!%p1953_p9)
}
 0x34e   : > { %s2028_s8 = smov 128   ;;  %s2029_s19 = smov 8  }
 0x34f   : > { %1742 = dma.vmem_to_hbm [thread:$0]  (%p2437_p6), %s2347_s20, 256, %s2353_s30, %s1291_s6, %s2028_s8, %s2028_s8, %s2029_s19  }
 0x350 PF: > { %s1320_s9 = sand.u32 1, %s1995_s12   ;;  %p2438_p12 = scmp.ne.s32.totalorder %s2425_s27, 0 }
 0x351   : > { %p2439_p4 = scmp.ge.s32.totalorder %s2015_s17, 2  ;;  %s1321_s16 = scalar_lea.sflag [#allocation8], %s1320_s9 }
 0x353   : > { %p1755_p10 = pnand %p2439_p4, %p2438_p12 }
 0x355   : > { %1990 = dma.done.wait (!%p1755_p10), %s1321_s16, 256  }
 0x356   : > { %1992 = vsyncadd (!%p1755_p10), %s1321_s16, 4294967040  ;;  %s22_s17 = sadd.s32 1, %s2015_s17   ;;  %s2440_s18 = sld [smem:[#allocation18_spill]] }
 0x357   : > { %p19_p13 = scmp.ge.s32.totalorder %s22_s17, 4   ;;  %s2441_s15 = sld [smem:[#allocation16_spill]] }
 0x358   : > { %s2442_s16 = sld [smem:[#allocation17_spill]]  ;;  %s2443_s12 = smov %s1999_s13 }
 0x359   : > { %s2444_s13 = smov %s2003_s14  ;;  %21 = sbr.rel (!%p19_p13) target bundleno = 11 (0xb), region = 109 }
 0x35c   : > { %s2445_s14 = smov %s2440_s18 }
 0x360   :  { %1326 = vsyncpa [#allocation7], 1 }
 0x361   :  { %1328 = vsyncpa [#allocation7 + $0x1], 1 }
 0x362   :  { %1329 = vsyncpa [#allocation10], 1 }
 0x363   :  { %1331 = vsyncpa [#allocation10 + $0x1], 1 }
 0x364   :  { %1332 = vsyncpa [#allocation8], 1 }
 0x365   :  { %1334 = vsyncpa [#allocation8 + $0x1], 1 }

</bundles_post_ra>
